<compile_context>
chip_gen: v5e
topology: v5e:2x2
jax: 0.10.0
libtpu: 0.0.40
codegen_flags: <defaults>
</compile_context>

<pallas_src>
import functools

import jax
import jax.numpy as jnp
from jax.experimental import pallas as pl
from jax.experimental.pallas import tpu as pltpu

EPS = 1e-5       # torch.nn.BatchNorm1d default
LANES = 128
SUBLANES = 8


def _round_up(x, m):
    return (x + m - 1) // m * m


# ----------------------------- fused kernel -----------------------------

def _fused_block_kernel(stride, n_slabs, L1, L1p, count, has_downsample, *refs):
    """conv1+bn1+relu -> conv2+bn2 -> (+ residual) -> relu, fully fused.

    Activations are 2-D: rows = (n, l_out) with L1p (>= L1 + 1, multiple of 8)
    rows per batch element (extra rows are zero padding), lanes = padded
    channels.
    """
    slabs = refs[:n_slabs]
    idx = n_slabs
    w1_ref, g1_ref, b1_ref, w2_ref, g2_ref, b2_ref = refs[idx:idx + 6]
    idx += 6
    if has_downsample:
        wd_ref, gd_ref, bd_ref = refs[idx:idx + 3]
        idx += 3
    o_ref = refs[idx]

    rows = o_ref.shape[0]
    inv_count = 1.0 / count

    # Valid-row mask (replaces the old l_pos HBM operand): rows r with
    # (r mod L1p) >= L1 are per-batch zero padding and must not contribute to
    # the batch statistics.  The mod is done in f32 (exact for these sizes).
    r = jax.lax.broadcasted_iota(jnp.int32, (rows, 1), 0).astype(jnp.float32)
    n_idx = jnp.floor(r / float(L1p))
    pos = r - n_idx * float(L1p)
    valid = pos <= float(L1) - 0.5                     # (rows, 1) bool

    def bn_scale_shift(y, gamma, beta):
        # training-mode BN, one-pass stats: var = E[y^2] - E[y]^2.  Padded
        # rows of y are zero, so dividing the sums by the true count is exact.
        mean = jnp.sum(y, axis=0, keepdims=True) * inv_count
        msq = jnp.sum(y * y, axis=0, keepdims=True) * inv_count
        var = jnp.maximum(msq - mean * mean, 0.0)
        scale = gamma * jax.lax.rsqrt(var + EPS)
        shift = beta - mean * scale
        return scale, shift

    # ---- conv1 taps straight from the (single-copy) input slabs ----
    # tap k reads padded position stride*l + k  ==  slab[k % stride] shifted
    # up by k // stride rows; the per-batch zero rows keep the shifts exact.
    xs = [s_ref[...] for s_ref in slabs]               # f32
    taps = []
    for k in range(3):
        p, q = k % stride, k // stride
        t = xs[p] if q == 0 else pltpu.roll(xs[p], shift=(rows - q) % rows, axis=0)
        taps.append(t)
    center = taps[1]                # f32: downsample / identity-residual input

    # ---- conv1 as ONE wide-K matmul (K = 3*ci_p), then bn1 + relu ----
    x1 = jnp.concatenate([t.astype(jnp.bfloat16) for t in taps], axis=1)
    y1 = jnp.dot(x1, w1_ref[...], preferred_element_type=jnp.float32)
    y1 = jnp.where(valid, y1, 0.0)
    s1, t1 = bn_scale_shift(y1, g1_ref[...], b1_ref[...])
    h = jnp.where(valid, jnp.maximum(y1 * s1 + t1, 0.0), 0.0)

    # ---- conv2 (k=3, stride=1, pad=1) as ONE wide-K matmul ----
    # Row shifts need no boundary masks: the zeroed padding rows between
    # batches supply the spatial zero padding.  f32 rolls (then cast) are used
    # deliberately -- sublane rotation of packed bf16 is the riskier lowering.
    h_prev = pltpu.roll(h, shift=1, axis=0)            # h[l-1]
    h_next = pltpu.roll(h, shift=rows - 1, axis=0)     # h[l+1]
    x2 = jnp.concatenate([h_prev.astype(jnp.bfloat16),
                          h.astype(jnp.bfloat16),
                          h_next.astype(jnp.bfloat16)], axis=1)
    y2 = jnp.dot(x2, w2_ref[...], preferred_element_type=jnp.float32)
    y2 = jnp.where(valid, y2, 0.0)
    s2, t2 = bn_scale_shift(y2, g2_ref[...], b2_ref[...])

    # ---- residual branch (no extra HBM operand: reuses conv1's center tap) ----
    if has_downsample:
        yd = jnp.dot(center.astype(jnp.bfloat16), wd_ref[...],
                     preferred_element_type=jnp.float32)
        yd = jnp.where(valid, yd, 0.0)
        sd, td = bn_scale_shift(yd, gd_ref[...], bd_ref[...])
        res = yd * sd + td
    else:
        res = center                                   # exact f32 identity

    # ---- bn2 affine + add + relu (lane-dense 128-wide store) ----
    o_ref[...] = jnp.maximum(y2 * s2 + t2 + res, 0.0).astype(o_ref.dtype)


# ----------------------------- wrapper / glue -----------------------------

_VMEM = pl.BlockSpec(memory_space=pltpu.MemorySpace.VMEM)


def _cat_weight(w, ci_p, co_p):
    """PyTorch conv weight (Cout, Cin, K) -> (K*ci_p, co_p) bf16, k-major."""
    cout, cin, k = w.shape
    wm = jnp.transpose(w, (2, 1, 0))                             # (K, Cin, Cout)
    wm = jnp.pad(wm, ((0, 0), (0, ci_p - cin), (0, co_p - cout)))
    return wm.reshape(k * ci_p, co_p).astype(jnp.bfloat16)


def _pad_vec(v, co_p):
    return jnp.pad(v, (0, co_p - v.shape[0])).reshape(1, co_p)


def basic_block_forward(x, params, stride):
    """x: (N, Cin, L) f32 -> (N, Cout, L_out) f32 (PyTorch NCL layout)."""
    N, Cin, L = x.shape
    Cout = params["w1"].shape[0]
    s = stride
    L1 = (L - 1) // s + 1                    # conv1 / downsample output length
    L1p = _round_up(L1 + 2, SUBLANES)        # per-batch rows (>=1 zero pad row)
    rows = N * L1p
    ci_p = _round_up(Cin, LANES)
    co_p = _round_up(Cout, LANES)
    has_downsample = (s != 1) or (Cin != Cout)
    n_slabs = min(s, 3)

    # Channels-last, channel-padded, spatially padded input: ONE copy in HBM.
    # For stride s it is split into s phase slabs (each input element appears
    # exactly once); every conv1 tap and the residual are then static row
    # shifts of a slab inside the kernel.
    xc = jnp.transpose(x, (0, 2, 1))                                   # (N, L, Cin)
    xcp = jnp.pad(xc, ((0, 0), (1, s * L1p - L - 1), (0, ci_p - Cin)))  # (N, s*L1p, ci_p)
    slabs = [xcp[:, p::s, :].reshape(rows, ci_p) for p in range(n_slabs)]

    w1 = _cat_weight(params["w1"], ci_p, co_p)           # (3*ci_p, co_p)
    w2 = _cat_weight(params["w2"], co_p, co_p)           # (3*co_p, co_p)
    g1, b1 = _pad_vec(params["g1"], co_p), _pad_vec(params["b1"], co_p)
    g2, b2 = _pad_vec(params["g2"], co_p), _pad_vec(params["b2"], co_p)

    operands = slabs + [w1, g1, b1, w2, g2, b2]
    if has_downsample:
        operands += [_cat_weight(params["wd"], ci_p, co_p),
                     _pad_vec(params["gd"], co_p), _pad_vec(params["bd"], co_p)]

    kernel = functools.partial(_fused_block_kernel, s, n_slabs, L1, L1p,
                               float(N * L1), has_downsample)
    out2d = pl.pallas_call(
        kernel,
        out_shape=jax.ShapeDtypeStruct((rows, co_p), jnp.float32),
        in_specs=[_VMEM] * len(operands),
        out_specs=_VMEM,
        compiler_params=pltpu.CompilerParams(vmem_limit_bytes=64 * 1024 * 1024),
    )(*operands)

    # strip row/channel padding, back to PyTorch NCL layout.  (If this block
    # fed another BasicBlock, the (rows, co_p) channels-last slab could be
    # kept as-is and the slice/transpose elided.)
    out = out2d.reshape(N, L1p, co_p)[:, :L1, :Cout]
    return jnp.transpose(out, (0, 2, 1))


# ----------------------------- reference -----------------------------

def reference_forward(x, params, stride, matmul_dtype=jnp.float32):
    """Pure-JAX PyTorch-semantics reference.  With matmul_dtype=bfloat16 the
    convolution inputs are rounded to bf16 (f32 accumulation), matching the
    kernel's MXU numerics; with float32 it is the exact f32 reference."""
    def conv1d(inp, w, s, p):
        return jax.lax.conv_general_dilated(
            inp.astype(matmul_dtype), w.astype(matmul_dtype),
            window_strides=(s,), padding=[(p, p)],
            dimension_numbers=("NCH", "OIH", "NCH"),
            preferred_element_type=jnp.float32)

    def bn(y, g, b):
        mean = jnp.mean(y, axis=(0, 2), keepdims=True)
        var = jnp.mean(jnp.square(y - mean), axis=(0, 2), keepdims=True)
        return ((y - mean) * jax.lax.rsqrt(var + EPS) * g[None, :, None]
                + b[None, :, None])

    Cout = params["w1"].shape[0]
    out = jax.nn.relu(bn(conv1d(x, params["w1"], stride, 1),
                         params["g1"], params["b1"]))
    out = bn(conv1d(out, params["w2"], 1, 1), params["g2"], params["b2"])
    if stride != 1 or x.shape[1] != Cout:
        identity = bn(conv1d(x, params["wd"], stride, 0),
                      params["gd"], params["bd"])
    else:
        identity = x
    return jax.nn.relu(out + identity)


# ----------------------------- main -----------------------------

if __name__ == "__main__":
    def make_params(key, cin, cout):
        ks = jax.random.split(key, 9)
        return {
            "w1": 0.3 * jax.random.normal(ks[0], (cout, cin, 3), jnp.float32),
            "g1": 1.0 + 0.1 * jax.random.normal(ks[1], (cout,), jnp.float32),
            "b1": 0.1 * jax.random.normal(ks[2], (cout,), jnp.float32),
            "w2": 0.3 * jax.random.normal(ks[3], (cout, cout, 3), jnp.float32),
            "g2": 1.0 + 0.1 * jax.random.normal(ks[4], (cout,), jnp.float32),
            "b2": 0.1 * jax.random.normal(ks[5], (cout,), jnp.float32),
            "wd": 0.3 * jax.random.normal(ks[6], (cout, cin, 1), jnp.float32),
            "gd": 1.0 + 0.1 * jax.random.normal(ks[7], (cout,), jnp.float32),
            "bd": 0.1 * jax.random.normal(ks[8], (cout,), jnp.float32),
        }

    fwd = jax.jit(basic_block_forward, static_argnums=2)

    key = jax.random.PRNGKey(0)
    configs = [
        # (N, Cin, Cout, L, stride)
        (2, 4, 8, 16, 2),      # downsample path: stride 2 + channel change
        (2, 8, 8, 16, 1),      # identity-residual path
        (2, 16, 32, 33, 2),    # odd length, stride 2 (exercises row padding)
    ]
    for i, (N, Cin, Cout, L, stride) in enumerate(configs):
        kp, kx = jax.random.split(jax.random.fold_in(key, i))
        params = make_params(kp, Cin, Cout)
        x = jax.random.normal(kx, (N, Cin, L), jnp.float32)

        out = jax.block_until_ready(fwd(x, params, stride))

        L1 = (L - 1) // stride + 1
        assert out.shape == (N, Cout, L1), out.shape

        # Compare against the bf16-matmul-input reference (same numerics policy
        # as the kernel; identical PyTorch forward semantics otherwise).
        ref = jax.block_until_ready(
            reference_forward(x, params, stride, matmul_dtype=jnp.bfloat16))
        max_err = float(jnp.max(jnp.abs(out - ref)))
        assert jnp.allclose(out, ref, atol=1e-2, rtol=1e-2), max_err

    print("KERNEL_OK")
</pallas_src>

<mosaic_0001>
module attributes {stable_mosaic.version = 11 : i64} {
  func.func @_fused_block_kernel(%arg0: memref<32x128xf32, #tpu.memory_space<vmem>>, %arg1: memref<32x128xf32, #tpu.memory_space<vmem>>, %arg2: memref<384x128xbf16, #tpu.memory_space<vmem>>, %arg3: memref<1x128xf32, #tpu.memory_space<vmem>>, %arg4: memref<1x128xf32, #tpu.memory_space<vmem>>, %arg5: memref<384x128xbf16, #tpu.memory_space<vmem>>, %arg6: memref<1x128xf32, #tpu.memory_space<vmem>>, %arg7: memref<1x128xf32, #tpu.memory_space<vmem>>, %arg8: memref<128x128xbf16, #tpu.memory_space<vmem>>, %arg9: memref<1x128xf32, #tpu.memory_space<vmem>>, %arg10: memref<1x128xf32, #tpu.memory_space<vmem>>, %arg11: memref<32x128xf32, #tpu.memory_space<vmem>>) attributes {dimension_semantics = [], scalar_prefetch = 0 : i64, scratch_operands = 0 : i64, tpu.core_type = #tpu.core_type<tc>} {
    %0 = tpu.iota {dimensions = array<i32: 0>} : vector<32x1xi32>
    %1 = arith.sitofp %0 : vector<32x1xi32> to vector<32x1xf32>
    %cst = arith.constant 1.600000e+01 : f32
    %2 = vector.broadcast %cst : f32 to vector<32x1xf32>
    %3 = arith.divf %1, %2 : vector<32x1xf32>
    %4 = math.floor %3 : vector<32x1xf32>
    %cst_0 = arith.constant 1.600000e+01 : f32
    %5 = vector.broadcast %cst_0 : f32 to vector<32x1xf32>
    %6 = arith.mulf %4, %5 : vector<32x1xf32>
    %7 = arith.subf %1, %6 : vector<32x1xf32>
    %cst_1 = arith.constant 7.500000e+00 : f32
    %8 = vector.broadcast %cst_1 : f32 to vector<32x1xf32>
    %9 = arith.cmpf ole, %7, %8 : vector<32x1xf32>
    %c0 = arith.constant 0 : index
    %c0_2 = arith.constant 0 : index
    %10 = vector.load %arg0[%c0, %c0_2] : memref<32x128xf32, #tpu.memory_space<vmem>>, vector<32x128xf32>
    %c0_3 = arith.constant 0 : index
    %c0_4 = arith.constant 0 : index
    %11 = vector.load %arg1[%c0_3, %c0_4] : memref<32x128xf32, #tpu.memory_space<vmem>>, vector<32x128xf32>
    %c31_i32 = arith.constant 31 : i32
    %12 = tpu.dynamic_rotate %10 by %c31_i32 dim 0 : vector<32x128xf32>, i32 -> vector<32x128xf32>
    %13 = arith.truncf %10 : vector<32x128xf32> to vector<32x128xbf16>
    %14 = arith.truncf %11 : vector<32x128xf32> to vector<32x128xbf16>
    %15 = arith.truncf %12 : vector<32x128xf32> to vector<32x128xbf16>
    %16 = tpu.concatenate %13, %14, %15 in 1 : vector<32x128xbf16>, vector<32x128xbf16>, vector<32x128xbf16> -> vector<32x384xbf16>
    %c0_5 = arith.constant 0 : index
    %c0_6 = arith.constant 0 : index
    %17 = vector.load %arg2[%c0_5, %c0_6] : memref<384x128xbf16, #tpu.memory_space<vmem>>, vector<384x128xbf16>
    %cst_7 = arith.constant dense<0.000000e+00> : vector<32x128xf32>
    %18 = tpu.matmul %16, %17, %cst_7 {dimension_numbers = #tpu.dot_dimension_numbers<[1], [0], [0], [1], [0, 0, 1, 1], [], []>} : vector<32x384xbf16>, vector<384x128xbf16>, vector<32x128xf32> -> vector<32x128xf32>
    %cst_8 = arith.constant 0.000000e+00 : f32
    %19 = vector.shape_cast %9 : vector<32x1xi1> to vector<32x1xi1>
    %20 = vector.broadcast %19 : vector<32x1xi1> to vector<32x128xi1>
    %21 = vector.broadcast %cst_8 : f32 to vector<32x128xf32>
    %22 = arith.select %20, %18, %21 : vector<32x128xi1>, vector<32x128xf32>
    %c0_9 = arith.constant 0 : index
    %c0_10 = arith.constant 0 : index
    %23 = vector.load %arg3[%c0_9, %c0_10] : memref<1x128xf32, #tpu.memory_space<vmem>>, vector<1x128xf32>
    %c0_11 = arith.constant 0 : index
    %c0_12 = arith.constant 0 : index
    %24 = vector.load %arg4[%c0_11, %c0_12] : memref<1x128xf32, #tpu.memory_space<vmem>>, vector<1x128xf32>
    %cst_13 = arith.constant dense<0.000000e+00> : vector<128xf32>
    %25 = vector.multi_reduction <add>, %22, %cst_13 [0] : vector<32x128xf32> to vector<128xf32>
    %26 = vector.shape_cast %25 : vector<128xf32> to vector<1x128xf32>
    %cst_14 = arith.constant 6.250000e-02 : f32
    %27 = vector.broadcast %cst_14 : f32 to vector<1x128xf32>
    %28 = arith.mulf %26, %27 : vector<1x128xf32>
    %29 = arith.mulf %22, %22 : vector<32x128xf32>
    %cst_15 = arith.constant dense<0.000000e+00> : vector<128xf32>
    %30 = vector.multi_reduction <add>, %29, %cst_15 [0] : vector<32x128xf32> to vector<128xf32>
    %31 = vector.shape_cast %30 : vector<128xf32> to vector<1x128xf32>
    %cst_16 = arith.constant 6.250000e-02 : f32
    %32 = vector.broadcast %cst_16 : f32 to vector<1x128xf32>
    %33 = arith.mulf %31, %32 : vector<1x128xf32>
    %34 = arith.mulf %28, %28 : vector<1x128xf32>
    %35 = arith.subf %33, %34 : vector<1x128xf32>
    %cst_17 = arith.constant 0.000000e+00 : f32
    %36 = vector.broadcast %cst_17 : f32 to vector<1x128xf32>
    %37 = arith.maximumf %35, %36 : vector<1x128xf32>
    %cst_18 = arith.constant 9.99999974E-6 : f32
    %38 = vector.broadcast %cst_18 : f32 to vector<1x128xf32>
    %39 = arith.addf %37, %38 : vector<1x128xf32>
    %40 = math.rsqrt %39 : vector<1x128xf32>
    %41 = arith.mulf %23, %40 : vector<1x128xf32>
    %42 = arith.mulf %28, %41 : vector<1x128xf32>
    %43 = arith.subf %24, %42 : vector<1x128xf32>
    %44 = vector.broadcast %41 : vector<1x128xf32> to vector<32x128xf32>
    %45 = arith.mulf %22, %44 : vector<32x128xf32>
    %46 = vector.broadcast %43 : vector<1x128xf32> to vector<32x128xf32>
    %47 = arith.addf %45, %46 : vector<32x128xf32>
    %cst_19 = arith.constant 0.000000e+00 : f32
    %48 = vector.broadcast %cst_19 : f32 to vector<32x128xf32>
    %49 = arith.maximumf %47, %48 : vector<32x128xf32>
    %cst_20 = arith.constant 0.000000e+00 : f32
    %50 = vector.shape_cast %9 : vector<32x1xi1> to vector<32x1xi1>
    %51 = vector.broadcast %50 : vector<32x1xi1> to vector<32x128xi1>
    %52 = vector.broadcast %cst_20 : f32 to vector<32x128xf32>
    %53 = arith.select %51, %49, %52 : vector<32x128xi1>, vector<32x128xf32>
    %c1_i32 = arith.constant 1 : i32
    %54 = tpu.dynamic_rotate %53 by %c1_i32 dim 0 : vector<32x128xf32>, i32 -> vector<32x128xf32>
    %c31_i32_21 = arith.constant 31 : i32
    %55 = tpu.dynamic_rotate %53 by %c31_i32_21 dim 0 : vector<32x128xf32>, i32 -> vector<32x128xf32>
    %56 = arith.truncf %54 : vector<32x128xf32> to vector<32x128xbf16>
    %57 = arith.truncf %53 : vector<32x128xf32> to vector<32x128xbf16>
    %58 = arith.truncf %55 : vector<32x128xf32> to vector<32x128xbf16>
    %59 = tpu.concatenate %56, %57, %58 in 1 : vector<32x128xbf16>, vector<32x128xbf16>, vector<32x128xbf16> -> vector<32x384xbf16>
    %c0_22 = arith.constant 0 : index
    %c0_23 = arith.constant 0 : index
    %60 = vector.load %arg5[%c0_22, %c0_23] : memref<384x128xbf16, #tpu.memory_space<vmem>>, vector<384x128xbf16>
    %cst_24 = arith.constant dense<0.000000e+00> : vector<32x128xf32>
    %61 = tpu.matmul %59, %60, %cst_24 {dimension_numbers = #tpu.dot_dimension_numbers<[1], [0], [0], [1], [0, 0, 1, 1], [], []>} : vector<32x384xbf16>, vector<384x128xbf16>, vector<32x128xf32> -> vector<32x128xf32>
    %cst_25 = arith.constant 0.000000e+00 : f32
    %62 = vector.shape_cast %9 : vector<32x1xi1> to vector<32x1xi1>
    %63 = vector.broadcast %62 : vector<32x1xi1> to vector<32x128xi1>
    %64 = vector.broadcast %cst_25 : f32 to vector<32x128xf32>
    %65 = arith.select %63, %61, %64 : vector<32x128xi1>, vector<32x128xf32>
    %c0_26 = arith.constant 0 : index
    %c0_27 = arith.constant 0 : index
    %66 = vector.load %arg6[%c0_26, %c0_27] : memref<1x128xf32, #tpu.memory_space<vmem>>, vector<1x128xf32>
    %c0_28 = arith.constant 0 : index
    %c0_29 = arith.constant 0 : index
    %67 = vector.load %arg7[%c0_28, %c0_29] : memref<1x128xf32, #tpu.memory_space<vmem>>, vector<1x128xf32>
    %cst_30 = arith.constant dense<0.000000e+00> : vector<128xf32>
    %68 = vector.multi_reduction <add>, %65, %cst_30 [0] : vector<32x128xf32> to vector<128xf32>
    %69 = vector.shape_cast %68 : vector<128xf32> to vector<1x128xf32>
    %cst_31 = arith.constant 6.250000e-02 : f32
    %70 = vector.broadcast %cst_31 : f32 to vector<1x128xf32>
    %71 = arith.mulf %69, %70 : vector<1x128xf32>
    %72 = arith.mulf %65, %65 : vector<32x128xf32>
    %cst_32 = arith.constant dense<0.000000e+00> : vector<128xf32>
    %73 = vector.multi_reduction <add>, %72, %cst_32 [0] : vector<32x128xf32> to vector<128xf32>
    %74 = vector.shape_cast %73 : vector<128xf32> to vector<1x128xf32>
    %cst_33 = arith.constant 6.250000e-02 : f32
    %75 = vector.broadcast %cst_33 : f32 to vector<1x128xf32>
    %76 = arith.mulf %74, %75 : vector<1x128xf32>
    %77 = arith.mulf %71, %71 : vector<1x128xf32>
    %78 = arith.subf %76, %77 : vector<1x128xf32>
    %cst_34 = arith.constant 0.000000e+00 : f32
    %79 = vector.broadcast %cst_34 : f32 to vector<1x128xf32>
    %80 = arith.maximumf %78, %79 : vector<1x128xf32>
    %cst_35 = arith.constant 9.99999974E-6 : f32
    %81 = vector.broadcast %cst_35 : f32 to vector<1x128xf32>
    %82 = arith.addf %80, %81 : vector<1x128xf32>
    %83 = math.rsqrt %82 : vector<1x128xf32>
    %84 = arith.mulf %66, %83 : vector<1x128xf32>
    %85 = arith.mulf %71, %84 : vector<1x128xf32>
    %86 = arith.subf %67, %85 : vector<1x128xf32>
    %87 = arith.truncf %11 : vector<32x128xf32> to vector<32x128xbf16>
    %c0_36 = arith.constant 0 : index
    %c0_37 = arith.constant 0 : index
    %88 = vector.load %arg8[%c0_36, %c0_37] : memref<128x128xbf16, #tpu.memory_space<vmem>>, vector<128x128xbf16>
    %cst_38 = arith.constant dense<0.000000e+00> : vector<32x128xf32>
    %89 = tpu.matmul %87, %88, %cst_38 {dimension_numbers = #tpu.dot_dimension_numbers<[1], [0], [0], [1], [0, 0, 1, 1], [], []>} : vector<32x128xbf16>, vector<128x128xbf16>, vector<32x128xf32> -> vector<32x128xf32>
    %cst_39 = arith.constant 0.000000e+00 : f32
    %90 = vector.shape_cast %9 : vector<32x1xi1> to vector<32x1xi1>
    %91 = vector.broadcast %90 : vector<32x1xi1> to vector<32x128xi1>
    %92 = vector.broadcast %cst_39 : f32 to vector<32x128xf32>
    %93 = arith.select %91, %89, %92 : vector<32x128xi1>, vector<32x128xf32>
    %c0_40 = arith.constant 0 : index
    %c0_41 = arith.constant 0 : index
    %94 = vector.load %arg9[%c0_40, %c0_41] : memref<1x128xf32, #tpu.memory_space<vmem>>, vector<1x128xf32>
    %c0_42 = arith.constant 0 : index
    %c0_43 = arith.constant 0 : index
    %95 = vector.load %arg10[%c0_42, %c0_43] : memref<1x128xf32, #tpu.memory_space<vmem>>, vector<1x128xf32>
    %cst_44 = arith.constant dense<0.000000e+00> : vector<128xf32>
    %96 = vector.multi_reduction <add>, %93, %cst_44 [0] : vector<32x128xf32> to vector<128xf32>
    %97 = vector.shape_cast %96 : vector<128xf32> to vector<1x128xf32>
    %cst_45 = arith.constant 6.250000e-02 : f32
    %98 = vector.broadcast %cst_45 : f32 to vector<1x128xf32>
    %99 = arith.mulf %97, %98 : vector<1x128xf32>
    %100 = arith.mulf %93, %93 : vector<32x128xf32>
    %cst_46 = arith.constant dense<0.000000e+00> : vector<128xf32>
    %101 = vector.multi_reduction <add>, %100, %cst_46 [0] : vector<32x128xf32> to vector<128xf32>
    %102 = vector.shape_cast %101 : vector<128xf32> to vector<1x128xf32>
    %cst_47 = arith.constant 6.250000e-02 : f32
    %103 = vector.broadcast %cst_47 : f32 to vector<1x128xf32>
    %104 = arith.mulf %102, %103 : vector<1x128xf32>
    %105 = arith.mulf %99, %99 : vector<1x128xf32>
    %106 = arith.subf %104, %105 : vector<1x128xf32>
    %cst_48 = arith.constant 0.000000e+00 : f32
    %107 = vector.broadcast %cst_48 : f32 to vector<1x128xf32>
    %108 = arith.maximumf %106, %107 : vector<1x128xf32>
    %cst_49 = arith.constant 9.99999974E-6 : f32
    %109 = vector.broadcast %cst_49 : f32 to vector<1x128xf32>
    %110 = arith.addf %108, %109 : vector<1x128xf32>
    %111 = math.rsqrt %110 : vector<1x128xf32>
    %112 = arith.mulf %94, %111 : vector<1x128xf32>
    %113 = arith.mulf %99, %112 : vector<1x128xf32>
    %114 = arith.subf %95, %113 : vector<1x128xf32>
    %115 = vector.broadcast %112 : vector<1x128xf32> to vector<32x128xf32>
    %116 = arith.mulf %93, %115 : vector<32x128xf32>
    %117 = vector.broadcast %114 : vector<1x128xf32> to vector<32x128xf32>
    %118 = arith.addf %116, %117 : vector<32x128xf32>
    %119 = vector.broadcast %84 : vector<1x128xf32> to vector<32x128xf32>
    %120 = arith.mulf %65, %119 : vector<32x128xf32>
    %121 = vector.broadcast %86 : vector<1x128xf32> to vector<32x128xf32>
    %122 = arith.addf %120, %121 : vector<32x128xf32>
    %123 = arith.addf %122, %118 : vector<32x128xf32>
    %cst_50 = arith.constant 0.000000e+00 : f32
    %124 = vector.broadcast %cst_50 : f32 to vector<32x128xf32>
    %125 = arith.maximumf %123, %124 : vector<32x128xf32>
    %c0_51 = arith.constant 0 : index
    %c0_52 = arith.constant 0 : index
    %126 = vector.load %arg11[%c0_51, %c0_52] : memref<32x128xf32, #tpu.memory_space<vmem>>, vector<32x128xf32>
    tpu.vector_store %arg11[%c0_51, %c0_52], %125 {strides = array<i32>} : memref<32x128xf32, #tpu.memory_space<vmem>>, vector<32x128xf32>,
    return
  }
}

</mosaic_0001>

<bundles_post_ra>
// kernel: basic_block_forward.1
= control target key start
LH: loop header
LB: loop body
LE: loop exit
PB: predicated region body
PF: predicated region fallthrough
CT: control target
= control target key end

     0   :  { %v38_v9 = vlaneseq  ;;  %s1763_s2 = inlined_call_operand.vmem [shape: bf16[384,128], index: 2, kind: input, shape index: {}]   ;;  %s1764_s0 = inlined_call_operand.vmem [shape: f32[32,128], index: 0, kind: input, shape index: {}]   ;;  %s1765_s1 = inlined_call_operand.vmem [shape: f32[32,128], index: 1, kind: input, shape index: {}]   ;;  %s1766_s8 = inlined_call_operand.vmem [shape: bf16[128,128], index: 8, kind: input, shape index: {}]   ;;  %s1767_s5 = inlined_call_operand.vmem [shape: bf16[384,128], index: 5, kind: input, shape index: {}]   ;;  %s1768_s3 = inlined_call_operand.vmem [shape: f32[1,128], index: 3, kind: input, shape index: {}]   ;;  %s1769_s4 = inlined_call_operand.vmem [shape: f32[1,128], index: 4, kind: input, shape index: {}]   ;;  %s1770_s9 = inlined_call_operand.vmem [shape: f32[1,128], index: 9, kind: input, shape index: {}]   ;;  %s1771_s10 = inlined_call_operand.vmem [shape: f32[1,128], index: 10, kind: input, shape index: {}]   ;;  %s1772_s6 = inlined_call_operand.vmem [shape: f32[1,128], index: 6, kind: input, shape index: {}]   ;;  %s1773_s7 = inlined_call_operand.vmem [shape: f32[1,128], index: 7, kind: input, shape index: {}]   ;;  %s1774_s11 = inlined_call_operand.vmem [shape: f32[32,128], index: 11, kind: output, shape index: {}]  }
   0x1   :  { %v1231_v0 = vld [vmem:[%s1763_s2 + $0x38] sm:$0xff]  ;;  %v1230_v3 = vld [vmem:[%s1763_s2 + $0x30] sm:$0xff]  ;;  %v1229_v6 = vld [vmem:[%s1763_s2 + $0x28] sm:$0xff] }
   0x2   :  { %v1239_v1 = vld [vmem:[%s1763_s2 + $0x78] sm:$0xff]  ;;  %331 = vmatpush.bf16.msra.mxu0 %v1231_v0  ;;  %v1238_v4 = vld [vmem:[%s1763_s2 + $0x70] sm:$0xff]  ;;  %v1237_v7 = vld [vmem:[%s1763_s2 + $0x68] sm:$0xff]  ;;  %v1402_v15 = vshrl.u32 %v38_v9, 7 }
   0x3   :  { %v1247_v2 = vld [vmem:[%s1763_s2 + $0xb8] sm:$0xff]  ;;  %350 = vmatpush.bf16.msra.mxu1 %v1239_v1  ;;  %v1246_v5 = vld [vmem:[%s1763_s2 + $0xb0] sm:$0xff]  ;;  %v1245_v8 = vld [vmem:[%s1763_s2 + $0xa8] sm:$0xff] }
   0x4   :  { %369 = vmatpush.bf16.msra.mxu2 %v1247_v2  ;;  %v1228_v10 = vld [vmem:[%s1763_s2 + $0x20] sm:$0xff]  ;;  %v75_v14 = vld [vmem:[%s1764_s0 + $0x8] sm:$0xff]  ;;  %v1407_v16 = vld [vmem:[%s1764_s0 + $0x10] sm:$0xff]  ;;  %vm86_vm0 = vcmp.lt.s32.totalorder %v1402_v15, 7  ;;  %vm469_vm9 = vcmp.lt.s32.totalorder %v1402_v15, 1 }
   0x5   :  { %v1236_v11 = vld [vmem:[%s1763_s2 + $0x60] sm:$0xff]  ;;  %v1227_v17 = vld [vmem:[%s1763_s2 + $0x18] sm:$0xff]  ;;  %v83_v21 = vrot.slane %v75_v14, 1  ;;  %v84_v22 = vrot.slane %v1407_v16, 1  ;;  %v1226_v23 = vld [vmem:[%s1763_s2 + $0x10] sm:$0xff]  ;;  %v92_v31 = vpack.c.bf16 %v75_v14, %v75_v14  ;;  %v93_v57 = vpack.c.bf16 %v1407_v16, %v1407_v16 }
   0x6   :  { %332 = vmatpush.bf16.msra.mxu0 %v1230_v3  ;;  %v1244_v12 = vld [vmem:[%s1763_s2 + $0xa0] sm:$0xff]  ;;  %v1235_v18 = vld [vmem:[%s1763_s2 + $0x58] sm:$0xff]  ;;  %v1234_v24 = vld [vmem:[%s1763_s2 + $0x50] sm:$0xff] }
   0x7   :  { %351 = vmatpush.bf16.msra.mxu1 %v1238_v4  ;;  %v1397_v13 = vld [vmem:[%s1764_s0] sm:$0xff]  ;;  %v1243_v19 = vld [vmem:[%s1763_s2 + $0x98] sm:$0xff]  ;;  %v79_v26 = vld [vmem:[%s1765_s1 + $0x8] sm:$0xff]  ;;  %v88_v28 = vsel %vm86_vm0, %v83_v21, %v84_v22  ;;  %v108_v40 = vunpack.c.l.b16 %v92_v31  ;;  %v109_v63 = vunpack.c.l.b16 %v93_v57 }
   0x8   :  { %370 = vmatpush.bf16.msra.mxu2 %v1246_v5  ;;  %v82_v20 = vrot.slane %v1397_v13, 1  ;;  %v78_v25 = vld [vmem:[%s1765_s1] sm:$0xff]  ;;  %v1242_v27 = vld [vmem:[%s1763_s2 + $0x90] sm:$0xff]  ;;  %v91_v30 = vpack.c.bf16 %v1397_v13, %v1397_v13  ;;  %v96_v33 = vpack.c.bf16 %v79_v26, %v79_v26  ;;  %v1225_v34 = vld [vmem:[%s1763_s2 + $0x8] sm:$0xff]  ;;  %v100_v37 = vpack.c.bf16 %v88_v28, %v88_v28 }
   0x9   :  { %v95_v32 = vpack.c.bf16 %v78_v25, %v78_v25  ;;  %v1233_v35 = vld [vmem:[%s1763_s2 + $0x48] sm:$0xff]  ;;  %v1224_v43 = vld [vmem:[%s1763_s2] sm:$0xff]  ;;  %v77_v48 = vld [vmem:[%s1764_s0 + $0x18] sm:$0xff]  ;;  %v43_v26 = vcvt.s32.f32 %v1402_v15 }
   0xa   :  { %333 = vmatpush.bf16.msra.mxu0 %v1229_v6  ;;  %v89_v29 = vsel %vm86_vm0, %v82_v20, %v83_v21  ;;  %v1241_v38 = vld [vmem:[%s1763_s2 + $0x88] sm:$0xff]  ;;  %v107_v39 = vunpack.c.l.b16 %v91_v30  ;;  %v120_v42 = vunpack.c.l.b16 %v96_v33  ;;  %v1232_v44 = vld [vmem:[%s1763_s2 + $0x40] sm:$0xff]  ;;  %v132_v46 = vunpack.c.l.b16 %v100_v37  ;;  %v80_v53 = vld [vmem:[%s1765_s1 + $0x10] sm:$0xff] }
   0xb   :  { %352 = vmatpush.bf16.msra.mxu1 %v1237_v7  ;;  %v99_v36 = vpack.c.bf16 %v89_v29, %v89_v29  ;;  %v119_v41 = vunpack.c.l.b16 %v95_v32  ;;  %v1240_v47 = vld [vmem:[%s1763_s2 + $0x80] sm:$0xff]  ;;  %v85_v52 = vrot.slane %v77_v48, 1  ;;  %v81_v54 = vld [vmem:[%s1765_s1 + $0x18] sm:$0xff]  ;;  %v94_v58 = vpack.c.bf16 %v77_v48, %v77_v48  ;;  %v1277_v13 = vld [vmem:[%s1766_s8 + $0x28] sm:$0xff] }
   0xc   :  { %371 = vmatpush.bf16.msra.mxu2 %v1245_v8  ;;  %v111_v49 = vpack.c.b16 %v108_v40, %v107_v39  ;;  %v97_v59 = vpack.c.bf16 %v80_v53, %v80_v53  ;;  %v98_v60 = vpack.c.bf16 %v81_v54, %v81_v54  ;;  %v1297_v8 = vmov 16.0   ;;  %v1279_v9 = vld [vmem:[%s1766_s8 + $0x38] sm:$0xff]  ;;  %v1276_v16 = vld [vmem:[%s1766_s8 + $0x20] sm:$0xff]  ;;  %v1273_v29 = vld [vmem:[%s1766_s8 + $0x8] sm:$0xff] }
   0xd   :  { %v131_v45 = vunpack.c.l.b16 %v99_v36  ;;  %v1463_v50 = vpack.c.b16 %v120_v42, %v119_v41  ;;  %v87_v55 = vsel %vm86_vm0, %v84_v22, %v85_v52  ;;  %v90_v56 = vsel %vm86_vm0, %v85_v52, %v82_v20  ;;  %v1272_v37 = vld [vmem:[%s1766_s8] sm:$0xff] }
   0xe   :  { %334 = vmatpush.bf16.msra.mxu0 %v1228_v10  ;;  %v101_v61 = vpack.c.bf16 %v87_v55, %v87_v55  ;;  %v102_v62 = vpack.c.bf16 %v90_v56, %v90_v56  ;;  %v110_v0 = vunpack.c.l.b16 %v94_v58  ;;  %v121_v1 = vunpack.c.l.b16 %v97_v59  ;;  %v1278_v10 = vld [vmem:[%s1766_s8 + $0x30] sm:$0xff] }
   0xf   :  { %353 = vmatpush.bf16.msra.mxu1 %v1236_v11  ;;  %v135_v51 = vpack.c.b16 %v132_v46, %v131_v45  ;;  %v122_v2 = vunpack.c.l.b16 %v98_v60  ;;  %1289 = vrcp.f32 %v1297_v8  ;;  %v41_v22 = vadd.s32 16, %v1402_v15 }
  0x10   :  { %372 = vmatpush.bf16.msra.mxu2 %v1244_v12  ;;  %v133_v3 = vunpack.c.l.b16 %v101_v61  ;;  %v134_v4 = vunpack.c.l.b16 %v102_v62  ;;  %v112_v5 = vpack.c.b16 %v110_v0, %v109_v63  ;;  %v42_v32 = vadd.s32 24, %v1402_v15 }
  0x11   :  { %v1478_v6 = vpack.c.b16 %v122_v2, %v121_v1 }
  0x12   :  { %335 = vmatpush.bf16.msra.mxu0 %v1227_v17  ;;  %v136_v7 = vpack.c.b16 %v134_v4, %v133_v3  ;;  %v46_v39 = vcvt.s32.f32 %v42_v32 }
  0x13   :  { %354 = vmatpush.bf16.msra.mxu1 %v1235_v18  ;;  %v1275_v18 = vld [vmem:[%s1766_s8 + $0x18] sm:$0xff] }
  0x14   :  { %373 = vmatpush.bf16.msra.mxu2 %v1243_v19  ;;  %v40_v19 = vadd.s32 8, %v1402_v15 }
  0x15   :  { %v1290_v11 = vpop.eup %1289 }
  0x16   :  { %336 = vmatpush.bf16.msra.mxu0 %v1226_v23  ;;  %v48_v12 = vmul.f32 16.0, %v1290_v11  ;;  %vm52_vm1 = vweird.f32 %v1290_v11  ;;  %v44_v25 = vcvt.s32.f32 %v40_v19 }
  0x17   :  { %355 = vmatpush.bf16.msra.mxu1 %v1234_v24  ;;  %v1274_v24 = vld [vmem:[%s1766_s8 + $0x10] sm:$0xff] }
  0x18   :  { %374 = vmatpush.bf16.msra.mxu2 %v1242_v27  ;;  %v49_v14 = vsub.f32 1.0, %v48_v12  ;;  %v45_v27 = vcvt.s32.f32 %v41_v22 }
  0x1a   :  { %337 = vmatpush.bf16.msra.mxu0 %v1225_v34  ;;  %v50_v17 = vmul.f32 %v1290_v11, %v49_v14 }
  0x1b   :  { %356 = vmatpush.bf16.msra.mxu1 %v1233_v35 }
  0x1c   :  { %375 = vmatpush.bf16.msra.mxu2 %v1241_v38  ;;  %v51_v23 = vadd.f32 %v1290_v11, %v50_v17 }
  0x1e   :  { %338 = vmatpush.bf16.msra.mxu0 %v1224_v43  ;;  %v53_v28 = vsel %vm52_vm1, %v1290_v11, %v51_v23  ;;  %v1254_v23 = vld [vmem:[%s1767_s5 + $0x30] sm:$0xff] }
  0x1f   :  { %357 = vmatpush.bf16.msra.mxu1 %v1232_v44  ;;  %v55_v31 = vmul.f32 %v53_v28, %v44_v25  ;;  %v54_v35 = vmul.f32 %v53_v28, %v43_v26  ;;  %v56_v36 = vmul.f32 %v53_v28, %v45_v27  ;;  %v57_v44 = vmul.f32 %v53_v28, %v46_v39 }
  0x20   :  { %376 = vmatpush.bf16.msra.mxu2 %v1240_v47 }
  0x21   :  { %339 = vmatmul.bf16.vlgmr.msra.gmra.mxu0 %v111_v49  ;;  %v59_v38 = vfloor.f32 %v55_v31  ;;  %v58_v40 = vfloor.f32 %v54_v35  ;;  %v60_v41 = vfloor.f32 %v56_v36  ;;  %v1269_v31 = vld [vmem:[%s1767_s5 + $0xa8] sm:$0xff] }
  0x22   :  { %358 = vmatmul.bf16.vlgmr.msra.gmra.mxu1 %v1463_v50 }
  0x23   :  { %377 = vmatmul.bf16.vlgmr.msra.gmra.mxu2 %v135_v51  ;;  %v63_v42 = vmul.f32 16.0, %v59_v38  ;;  %v62_v45 = vmul.f32 16.0, %v58_v40  ;;  %v64_v48 = vmul.f32 16.0, %v60_v41  ;;  %v61_v51 = vfloor.f32 %v57_v44  ;;  %v1268_v38 = vld [vmem:[%s1767_s5 + $0xa0] sm:$0xff]  ;;  %v1259_v41 = vld [vmem:[%s1767_s5 + $0x58] sm:$0xff] }
  0x24   :  { %890 = vmatpush.bf16.msrb.mxu2 %v1279_v9  ;;  %v1251_v44 = vld [vmem:[%s1767_s5 + $0x18] sm:$0xff] }
  0x25   :  { %v1510_v49 = vsub.f32 %v44_v25, %v63_v42  ;;  %v1512_v55 = vsub.f32 %v43_v26, %v62_v45  ;;  %v1514_v56 = vsub.f32 %v45_v27, %v64_v48  ;;  %v65_v59 = vmul.f32 16.0, %v61_v51  ;;  %v1261_v27 = vld [vmem:[%s1767_s5 + $0x68] sm:$0xff]  ;;  %v1267_v45 = vld [vmem:[%s1767_s5 + $0x98] sm:$0xff]  ;;  %v1258_v48 = vld [vmem:[%s1767_s5 + $0x50] sm:$0xff] }
  0x27   :  { %vm71_vm2 = vcmp.le.f32.partialorder %v1510_v49, 7.5  ;;  %vm70_vm3 = vcmp.le.f32.partialorder %v1512_v55, 7.5  ;;  %vm72_vm4 = vcmp.le.f32.partialorder %v1514_v56, 7.5  ;;  %v1523_v0 = vsub.f32 %v46_v39, %v65_v59  ;;  %v1249_v59 = vld [vmem:[%s1767_s5 + $0x8] sm:$0xff] }
  0x28   :  { %891 = vmatpush.bf16.msrb.mxu2 %v1278_v10  ;;  %v1546_v10 = vld [vmem:[%s1767_s5 + $0x78] sm:$0xff] }
  0x29   :  { %vm73_vm5 = vcmp.le.f32.partialorder %v1523_v0, 7.5  ;;  %741 = vmatpush.bf16.msrb.mxu0 %v1546_v10 }
  0x2c   :  { %892 = vmatpush.bf16.msrb.mxu2 %v1277_v13 }
  0x30   :  { %893 = vmatpush.bf16.msrb.mxu2 %v1276_v16  ;;  %v1255_v16 = vld [vmem:[%s1767_s5 + $0x38] sm:$0xff] }
  0x31   :  { %344 = vmatmul.bf16.gmra.mxu0 %v112_v5  ;;  %722 = vmatpush.bf16.msra.mxu3 %v1255_v16 }
  0x32   :  { %363 = vmatmul.bf16.gmra.mxu1 %v1478_v6 }
  0x33   :  { %382 = vmatmul.bf16.gmra.mxu2 %v136_v7 }
  0x34   :  { %894 = vmatpush.bf16.msrb.mxu2 %v1275_v18 }
  0x35   :  { %723 = vmatpush.bf16.msra.mxu3 %v1254_v23 }
  0x38   :  { %895 = vmatpush.bf16.msrb.mxu2 %v1274_v24  ;;  %v1270_v24 = vld [vmem:[%s1767_s5 + $0xb0] sm:$0xff] }
  0x3c   :  { %896 = vmatpush.bf16.msrb.mxu2 %v1273_v29 }
  0x40   :  { %897 = vmatpush.bf16.msrb.mxu2 %v1272_v37  ;;  %v1252_v37 = vld [vmem:[%s1767_s5 + $0x20] sm:$0xff] }
  0x43   :  { %898 = vmatmul.bf16.vlgmr.msrb.gmra.mxu2 %v1463_v50 }
  0x53   :  { %903 = vmatmul.bf16.gmra.mxu2 %v1478_v6  ;;  %v1271_v6 = vld [vmem:[%s1767_s5 + $0xb8] sm:$0xff] }
  0x54   :  { %760 = vmatpush.bf16.msrb.mxu1 %v1271_v6 }
  0x58   :  { %761 = vmatpush.bf16.msrb.mxu1 %v1270_v24 }
  0x5c   :  { %762 = vmatpush.bf16.msrb.mxu1 %v1269_v31 }
  0x60   :  { %763 = vmatpush.bf16.msrb.mxu1 %v1268_v38 }
  0x64   :  { %764 = vmatpush.bf16.msrb.mxu1 %v1267_v45 }
  0x9e   :  { %v340_v20 = vpop.f32.mrf.mxu0 }
  0x9f   :  { %v359_v21 = vpop.f32.mrf.mxu1 }
  0xa0   :  { %v360_v52 = vadd.f32 %v359_v21, %v340_v20  ;;  %v1566_v20 = vld [vmem:[%s1767_s5 + $0x70] sm:$0xff] }
  0xa1   :  { %742 = vmatpush.bf16.msrb.mxu0 %v1566_v20 }
  0xa5   :  { %743 = vmatpush.bf16.msrb.mxu0 %v1261_v27 }
  0xa6   :  { %v378_v30 = vpop.f32.mrf.mxu2  ;;  %v342_v33 = vpop.f32.mrf.mxu0 }
  0xa7   :  { %v361_v34 = vpop.f32.mrf.mxu1  ;;  %v379_v50 = vadd.f32 %v378_v30, %v360_v52  ;;  %v1253_v30 = vld [vmem:[%s1767_s5 + $0x28] sm:$0xff]  ;;  %v1250_v52 = vld [vmem:[%s1767_s5 + $0x10] sm:$0xff] }
  0xa8   :  { %v362_v53 = vadd.f32 %v361_v34, %v342_v33  ;;  %v1260_v34 = vld [vmem:[%s1767_s5 + $0x60] sm:$0xff]  ;;  %724 = vmatpush.bf16.msra.mxu3 %v1253_v30 }
  0xa9   :  { %v1527_v1 = vsel %vm70_vm3, %v379_v50, 0.0  ;;  %744 = vmatpush.bf16.msrb.mxu0 %v1260_v34  ;;  %v1265_v50 = vld [vmem:[%s1767_s5 + $0x88] sm:$0xff] }
  0xaa   :  { %v412_v5 = vmul.f32 %v1527_v1, %v1527_v1 }
  0xac   :  { %725 = vmatpush.bf16.msra.mxu3 %v1252_v37 }
  0xad   :  { %745 = vmatpush.bf16.msrb.mxu0 %v1259_v41 }
  0xae   :  { %v380_v43 = vpop.f32.mrf.mxu2  ;;  %v345_v46 = vpop.f32.mrf.mxu0 }
  0xaf   :  { %v364_v47 = vpop.f32.mrf.mxu1  ;;  %v381_v57 = vadd.f32 %v380_v43, %v362_v53  ;;  %v1266_v53 = vld [vmem:[%s1767_s5 + $0x90] sm:$0xff] }
  0xb0   :  { %v365_v54 = vadd.f32 %v364_v47, %v345_v46  ;;  %726 = vmatpush.bf16.msra.mxu3 %v1251_v44  ;;  %765 = vmatpush.bf16.msrb.mxu1 %v1266_v53 }
  0xb1   :  { %v1521_v61 = vsel %vm71_vm2, %v381_v57, 0.0  ;;  %746 = vmatpush.bf16.msrb.mxu0 %v1258_v48  ;;  %v1257_v57 = vld [vmem:[%s1767_s5 + $0x48] sm:$0xff] }
  0xb2   :  { %v413_v3 = vmul.f32 %v1521_v61, %v1521_v61  ;;  %v402_v7 = vadd.f32 %v1521_v61, %v1527_v1 }
  0xb4   :  { %v416_v12 = vadd.f32 %v413_v3, %v412_v5  ;;  %727 = vmatpush.bf16.msra.mxu3 %v1250_v52  ;;  %766 = vmatpush.bf16.msrb.mxu1 %v1265_v50 }
  0xb5   :  { %747 = vmatpush.bf16.msrb.mxu0 %v1257_v57 }
  0xb6   :  { %v383_v58 = vpop.f32.mrf.mxu2  ;;  %v347_v62 = vpop.f32.mrf.mxu0 }
  0xb7   :  { %v384_v60 = vadd.f32 %v383_v58, %v365_v54  ;;  %v366_v63 = vpop.f32.mrf.mxu1 }
  0xb8   :  { %v367_v4 = vadd.f32 %v366_v63, %v347_v62  ;;  %728 = vmatpush.bf16.msra.mxu3 %v1249_v59  ;;  %v1248_v62 = vld [vmem:[%s1767_s5] sm:$0xff] }
  0xb9   :  { %v1531_v2 = vsel %vm72_vm4, %v384_v60, 0.0  ;;  %v1623_v60 = vld [vmem:[%s1767_s5 + $0x40] sm:$0xff] }
  0xba   :  { %v414_v8 = vmul.f32 %v1531_v2, %v1531_v2  ;;  %v403_v13 = vadd.f32 %v402_v7, %v1531_v2  ;;  %748 = vmatpush.bf16.msrb.mxu0 %v1623_v60  ;;  %v1264_v63 = vld [vmem:[%s1767_s5 + $0x80] sm:$0xff] }
  0xbb   :  { %767 = vmatpush.bf16.msrb.mxu1 %v1264_v63 }
  0xbc   :  { %v417_v17 = vadd.f32 %v416_v12, %v414_v8  ;;  %729 = vmatpush.bf16.msra.mxu3 %v1248_v62 }
  0xbe   :  { %v385_v9 = vpop.f32.mrf.mxu2 }
  0xbf   :  { %v386_v11 = vadd.f32 %v385_v9, %v367_v4  ;;  %v400_v9 = vld [vmem:[%s1768_s3] sm:$0x1] }
  0xc0   :  { %1280 = vmatpush.bf16.msrb.mxu3 %v1546_v10  ;;  %v401_v10 = vld [vmem:[%s1769_s4] sm:$0x1] }
  0xc1   :  { %v1552_v14 = vsel %vm73_vm5, %v386_v11, 0.0 }
  0xc2   :  { %v404_v18 = vadd.f32 %v403_v13, %v1552_v14  ;;  %v415_v19 = vmul.f32 %v1552_v14, %v1552_v14 }
  0xc4   :  { %v405_v21 = vrot.slane %v404_v18, 4  ;;  %v418_v22 = vadd.f32 %v417_v17, %v415_v19  ;;  %1281 = vmatpush.bf16.msrb.mxu3 %v1566_v20 }
  0xc6   :  { %v406_v25 = vadd.f32 %v405_v21, %v404_v18  ;;  %v419_v26 = vrot.slane %v418_v22, 4  ;;  %v899_v15 = vpop.f32.mrf.mxu2 }
  0xc8   :  { %v407_v28 = vrot.slane %v406_v25, 2  ;;  %v420_v29 = vadd.f32 %v419_v26, %v418_v22  ;;  %1282 = vmatpush.bf16.msrb.mxu3 %v1261_v27 }
  0xca   :  { %v408_v32 = vadd.f32 %v407_v28, %v406_v25  ;;  %v421_v33 = vrot.slane %v420_v29, 2 }
  0xcc   :  { %v409_v35 = vrot.slane %v408_v32, 1  ;;  %v422_v36 = vadd.f32 %v421_v33, %v420_v29  ;;  %1283 = vmatpush.bf16.msrb.mxu3 %v1260_v34 }
  0xce   :  { %v410_v39 = vadd.f32 %v409_v35, %v408_v32  ;;  %v423_v40 = vrot.slane %v422_v36, 1 }
  0xd0   :  { %v411_v42 = vmul.f32 0.0625, %v410_v39  ;;  %v424_v43 = vadd.f32 %v423_v40, %v422_v36  ;;  %1284 = vmatpush.bf16.msrb.mxu3 %v1259_v41 }
  0xd2   :  { %v425_v46 = vmul.f32 0.0625, %v424_v43  ;;  %v426_v47 = vmul.f32 %v411_v42, %v411_v42 }
  0xd4   :  { %v427_v51 = vsub.f32 %v425_v46, %v426_v47  ;;  %1285 = vmatpush.bf16.msrb.mxu3 %v1258_v48 }
  0xd6   :  { %v428_v54 = vmax.f32 %v427_v51, 0.0 }
  0xd8   :  { %v429_v58 = vadd.f32 1e-05, %v428_v54  ;;  %1286 = vmatpush.bf16.msrb.mxu3 %v1257_v57 }
  0xda   :  { %1291 = vrsqrt.f32 %v429_v58  ;;  %vm436_vm7 = vweird.f32 %v429_v58 }
  0xdc   :  { %1287 = vmatpush.bf16.msrb.mxu3 %v1623_v60 }
  0xe0   :  { %v1292_v3 = vpop.eup %1291 }
  0xe1   :  { %v431_v4 = vmul.f32 %v1292_v3, %v429_v58  ;;  %vm437_vm6 = vweird.f32 %v1292_v3 }
  0xe2   :  { %vm438_vm8 = vmor %vm436_vm7, %vm437_vm6 }
  0xe3   :  { %v432_v5 = vmul.f32 %v1292_v3, %v431_v4 }
  0xe5   :  { %v433_v7 = vmul.f32 0.5, %v432_v5 }
  0xe7   :  { %v434_v8 = vsub.f32 1.5, %v433_v7 }
  0xe9   :  { %v435_v11 = vmul.f32 %v1292_v3, %v434_v8 }
  0xeb   :  { %v439_v12 = vsel %vm438_vm8, %v1292_v3, %v435_v11 }
  0xec   :  { %v440_v13 = vmul.f32 %v439_v12, %v400_v9 }
  0xee   :  { %v441_v16 = vmul.f32 %v440_v13, %v411_v42  ;;  %v444_v6 = vperm.slane %v440_v13, 0 }
  0xf0   :  { %v442_v17 = vsub.f32 %v401_v10, %v441_v16  ;;  %v449_v18 = vmul.f32 %v444_v6, %v1552_v14  ;;  %v446_v20 = vmul.f32 %v444_v6, %v1527_v1  ;;  %v447_v21 = vmul.f32 %v444_v6, %v1521_v61 }
  0xf1   :  { %v448_v22 = vmul.f32 %v444_v6, %v1531_v2 }
  0xf2   :  { %v451_v19 = vperm.slane %v442_v17, 0 }
  0xf4   :  { %v456_v23 = vadd.f32 %v451_v19, %v449_v18  ;;  %v453_v24 = vadd.f32 %v451_v19, %v446_v20  ;;  %v454_v25 = vadd.f32 %v451_v19, %v447_v21  ;;  %v455_v26 = vadd.f32 %v451_v19, %v448_v22  ;;  %v901_v22 = vpop.f32.mrf.mxu2 }
  0xf6   :  { %v460_v27 = vmax.f32 %v456_v23, 0.0  ;;  %v457_v28 = vmax.f32 %v453_v24, 0.0  ;;  %v458_v29 = vmax.f32 %v454_v25, 0.0  ;;  %v459_v30 = vmax.f32 %v455_v26, 0.0 }
  0xf7   :  { %v1672_v24 = vsel %vm70_vm3, %v899_v15, 0.0  ;;  %v1676_v25 = vsel %vm71_vm2, %v901_v22, 0.0 }
  0xf8   :  { %v464_v14 = vsel %vm73_vm5, %v460_v27, 0.0  ;;  %v461_v1 = vsel %vm70_vm3, %v457_v28, 0.0  ;;  %v462_v61 = vsel %vm71_vm2, %v458_v29, 0.0  ;;  %v463_v2 = vsel %vm72_vm4, %v459_v30, 0.0 }
  0xf9   :  { %v474_v31 = vrot.slane %v461_v1, 1  ;;  %v475_v32 = vrot.slane %v462_v61, 1  ;;  %v486_v33 = vpack.c.bf16 %v461_v1, %v461_v1  ;;  %v487_v34 = vpack.c.bf16 %v462_v61, %v462_v61 }
  0xfa   :  { %v465_v35 = vrot.slane %v461_v1, 7  ;;  %v466_v36 = vrot.slane %v462_v61, 7  ;;  %v468_v37 = vrot.slane %v464_v14, 7  ;;  %v476_v38 = vrot.slane %v463_v2, 1 }
  0xfb   :  { %v510_v39 = vunpack.c.l.b16 %v486_v33  ;;  %v511_v40 = vunpack.c.l.b16 %v487_v34  ;;  %v480_v41 = vsel %vm86_vm0, %v474_v31, %v475_v32  ;;  %v467_v50 = vrot.slane %v463_v2, 7 }
  0xfc   :  { %v472_v42 = vsel %vm469_vm9, %v465_v35, %v466_v36  ;;  %v473_v43 = vsel %vm469_vm9, %v468_v37, %v465_v35  ;;  %v479_v44 = vsel %vm86_vm0, %v475_v32, %v476_v38  ;;  %v490_v45 = vpack.c.bf16 %v480_v41, %v480_v41  ;;  %v904_v23 = vpop.f32.mrf.mxu2 }
  0xfd   :  { %v514_v46 = vpack.c.b16 %v511_v40, %v510_v39  ;;  %v482_v47 = vpack.c.bf16 %v473_v43, %v473_v43  ;;  %v483_v48 = vpack.c.bf16 %v472_v42, %v472_v42  ;;  %v491_v51 = vpack.c.bf16 %v479_v44, %v479_v44 }
  0xfe   :  { %v522_v52 = vunpack.c.l.b16 %v490_v45  ;;  %v477_v62 = vrot.slane %v464_v14, 1  ;;  %v470_v63 = vsel %vm469_vm9, %v467_v50, %v468_v37  ;;  %v471_v60 = vsel %vm469_vm9, %v466_v36, %v467_v50 }
  0xff   :  { %749 = vmatmul.bf16.vlgmr.msrb.gmra.mxu0 %v514_v46  ;;  %v498_v53 = vunpack.c.l.b16 %v482_v47  ;;  %v499_v54 = vunpack.c.l.b16 %v483_v48  ;;  %v523_v57 = vunpack.c.l.b16 %v491_v51  ;;  %v484_v5 = vpack.c.bf16 %v471_v60, %v471_v60 }
 0x100   :  { %v478_v3 = vsel %vm86_vm0, %v476_v38, %v477_v62  ;;  %v481_v4 = vsel %vm86_vm0, %v477_v62, %v474_v31  ;;  %v485_v7 = vpack.c.bf16 %v470_v63, %v470_v63  ;;  %v488_v17 = vpack.c.bf16 %v463_v2, %v463_v2 }
 0x101   :  { %v502_v58 = vpack.c.b16 %v499_v54, %v498_v53  ;;  %v526_v59 = vpack.c.b16 %v523_v57, %v522_v52  ;;  %v492_v8 = vpack.c.bf16 %v478_v3, %v478_v3  ;;  %v493_v9 = vpack.c.bf16 %v481_v4, %v481_v4 }
 0x102   :  { %v500_v11 = vunpack.c.l.b16 %v484_v5  ;;  %v501_v12 = vunpack.c.l.b16 %v485_v7  ;;  %v489_v18 = vpack.c.bf16 %v464_v14, %v464_v14  ;;  %v512_v19 = vunpack.c.l.b16 %v488_v17 }
 0x103   :  { %730 = vmatmul.bf16.vlgmr.msra.gmra.mxu3 %v502_v58  ;;  %768 = vmatmul.bf16.vlgmr.msrb.gmra.mxu1 %v526_v59  ;;  %v524_v13 = vunpack.c.l.b16 %v492_v8  ;;  %v525_v10 = vunpack.c.l.b16 %v493_v9  ;;  %v925_v26 = vmul.f32 %v1672_v24, %v1672_v24  ;;  %v915_v27 = vadd.f32 %v1676_v25, %v1672_v24 }
 0x104   :  { %v503_v16 = vpack.c.b16 %v501_v12, %v500_v11  ;;  %v513_v20 = vunpack.c.l.b16 %v489_v18  ;;  %v926_v28 = vmul.f32 %v1676_v25, %v1676_v25  ;;  %v1686_v29 = vsel %vm72_vm4, %v904_v23, 0.0  ;;  %v906_v30 = vpop.f32.mrf.mxu2 }
 0x105   :  { %v527_v6 = vpack.c.b16 %v525_v10, %v524_v13  ;;  %v916_v1 = vadd.f32 %v915_v27, %v1686_v29  ;;  %v927_v61 = vmul.f32 %v1686_v29, %v1686_v29  ;;  %v1693_v2 = vsel %vm73_vm5, %v906_v30, 0.0 }
 0x106   :  { %v515_v21 = vpack.c.b16 %v513_v20, %v512_v19  ;;  %v929_v14 = vadd.f32 %v926_v28, %v925_v26  ;;  %v928_v33 = vmul.f32 %v1693_v2, %v1693_v2 }
 0x107   :  { %v917_v32 = vadd.f32 %v916_v1, %v1693_v2 }
 0x108   :  { %v930_v31 = vadd.f32 %v929_v14, %v927_v61 }
 0x109   :  { %v918_v35 = vrot.slane %v917_v32, 4 }
 0x10a   :  { %v931_v36 = vadd.f32 %v930_v31, %v928_v33 }
 0x10b   :  { %v919_v37 = vadd.f32 %v918_v35, %v917_v32 }
 0x10c   :  { %v932_v38 = vrot.slane %v931_v36, 4 }
 0x10d   :  { %v920_v40 = vrot.slane %v919_v37, 2 }
 0x10e   :  { %v933_v41 = vadd.f32 %v932_v38, %v931_v36 }
 0x10f   :  { %v921_v43 = vadd.f32 %v920_v40, %v919_v37 }
 0x110   :  { %v934_v44 = vrot.slane %v933_v41, 2 }
 0x111   :  { %v922_v47 = vrot.slane %v921_v43, 1 }
 0x112   :  { %v935_v48 = vadd.f32 %v934_v44, %v933_v41 }
 0x113   :  { %735 = vmatmul.bf16.gmra.mxu3 %v503_v16  ;;  %773 = vmatmul.bf16.gmra.mxu1 %v527_v6  ;;  %v923_v52 = vadd.f32 %v922_v47, %v921_v43 }
 0x114   :  { %v936_v53 = vrot.slane %v935_v48, 1 }
 0x115   :  { %v1698_v57 = vmul.f32 0.0625, %v923_v52 }
 0x116   :  { %v937_v58 = vadd.f32 %v936_v53, %v935_v48 }
 0x117   :  { %v939_v63 = vmul.f32 %v1698_v57, %v1698_v57 }
 0x118   :  { %v938_v62 = vmul.f32 0.0625, %v937_v58 }
 0x11a   :  { %v940_v8 = vsub.f32 %v938_v62, %v939_v63 }
 0x11c   :  { %v941_v13 = vmax.f32 %v940_v8, 0.0 }
 0x123   :  { %754 = vmatmul.bf16.vlgmr.msrb.gmra.mxu3 %v515_v21  ;;  %v942_v21 = vadd.f32 1e-05, %v941_v13 }
 0x125   :  { %1293 = vrsqrt.f32 %v942_v21  ;;  %vm949_vm10 = vweird.f32 %v942_v21 }
 0x12b   :  { %v1294_v33 = vpop.eup %1293 }
 0x12c   :  { %v944_v36 = vmul.f32 %v1294_v33, %v942_v21  ;;  %vm950_vm11 = vweird.f32 %v1294_v33 }
 0x12d   :  { %vm951_vm12 = vmor %vm949_vm10, %vm950_vm11 }
 0x12e   :  { %v945_v40 = vmul.f32 %v1294_v33, %v944_v36 }
 0x17c   :  { %v750_v46 = vpop.f32.mrf.mxu0 }
 0x180   :  { %v769_v42 = vpop.f32.mrf.mxu1 }
 0x184   :  { %v752_v59 = vpop.f32.mrf.mxu0 }
 0x186   :  { %v731_v34 = vpop.f32.mrf.mxu3 }
 0x187   :  { %v751_v60 = vadd.f32 %v750_v46, %v731_v34 }
 0x188   :  { %v771_v51 = vpop.f32.mrf.mxu1 }
 0x189   :  { %v770_v9 = vadd.f32 %v769_v42, %v751_v60 }
 0x18b   :  { %v1708_v10 = vsel %vm70_vm3, %v770_v9, 0.0 }
 0x18c   :  { %v795_v19 = vmul.f32 %v1708_v10, %v1708_v10 }
 0x18e   :  { %v733_v39 = vpop.f32.mrf.mxu3 }
 0x18f   :  { %v753_v50 = vadd.f32 %v752_v59, %v733_v39 }
 0x190   :  { %v774_v3 = vpop.f32.mrf.mxu1 }
 0x191   :  { %v772_v5 = vadd.f32 %v771_v51, %v753_v50 }
 0x193   :  { %v1704_v12 = vsel %vm71_vm2, %v772_v5, 0.0  ;;  %v783_v5 = vld [vmem:[%s1772_s6] sm:$0x1] }
 0x194   :  { %v796_v6 = vmul.f32 %v1704_v12, %v1704_v12  ;;  %v785_v49 = vadd.f32 %v1704_v12, %v1708_v10 }
 0x196   :  { %v736_v45 = vpop.f32.mrf.mxu3  ;;  %v799_v56 = vadd.f32 %v796_v6, %v795_v19 }
 0x198   :  { %v776_v20 = vpop.f32.mrf.mxu1 }
 0x19e   :  { %v738_v54 = vpop.f32.mrf.mxu3 }
 0x1a6   :  { %v755_v4 = vpop.f32.mrf.mxu3 }
 0x1a7   :  { %v756_v7 = vadd.f32 %v755_v4, %v736_v45  ;;  %v946_v45 = vmul.f32 0.5, %v945_v40  ;;  %v914_v4 = vld [vmem:[%s1771_s10] sm:$0x1] }
 0x1a9   :  { %v775_v11 = vadd.f32 %v774_v3, %v756_v7  ;;  %v947_v48 = vsub.f32 1.5, %v946_v45 }
 0x1ab   :  { %v1712_v16 = vsel %vm72_vm4, %v775_v11, 0.0  ;;  %v948_v52 = vmul.f32 %v1294_v33, %v947_v48 }
 0x1ac   :  { %v797_v55 = vmul.f32 %v1712_v16, %v1712_v16  ;;  %v786_v22 = vadd.f32 %v785_v49, %v1712_v16 }
 0x1ad   :  { %v952_v58 = vsel %vm951_vm12, %v1294_v33, %v948_v52 }
 0x1ae   :  { %v757_v17 = vpop.f32.mrf.mxu3  ;;  %v800_v26 = vadd.f32 %v799_v56, %v797_v55 }
 0x1af   :  { %v758_v18 = vadd.f32 %v757_v17, %v738_v54  ;;  %v913_v54 = vld [vmem:[%s1770_s9] sm:$0x1] }
 0x1b0   :  { %v953_v50 = vmul.f32 %v952_v58, %v913_v54 }
 0x1b1   :  { %v777_v15 = vadd.f32 %v776_v20, %v758_v18 }
 0x1b2   :  { %v954_v60 = vmul.f32 %v953_v50, %v1698_v57  ;;  %v957_v8 = vperm.slane %v953_v50, 0  ;;  %v784_v57 = vld [vmem:[%s1773_s7] sm:$0x1] }
 0x1b3   :  { %v1725_v23 = vsel %vm73_vm5, %v777_v15, 0.0 }
 0x1b4   :  { %v787_v27 = vadd.f32 %v786_v22, %v1725_v23  ;;  %v798_v28 = vmul.f32 %v1725_v23, %v1725_v23  ;;  %v955_v9 = vsub.f32 %v914_v4, %v954_v60  ;;  %v959_v6 = vmul.f32 %v957_v8, %v1672_v24 }
 0x1b5   :  { %v960_v19 = vmul.f32 %v957_v8, %v1676_v25  ;;  %v961_v49 = vmul.f32 %v957_v8, %v1686_v29  ;;  %v962_v20 = vmul.f32 %v957_v8, %v1693_v2 }
 0x1b6   :  { %v788_v30 = vrot.slane %v787_v27, 4  ;;  %v801_v14 = vadd.f32 %v800_v26, %v798_v28  ;;  %v964_v55 = vperm.slane %v955_v9, 0 }
 0x1b8   :  { %v789_v1 = vadd.f32 %v788_v30, %v787_v27  ;;  %v802_v61 = vrot.slane %v801_v14, 4  ;;  %v966_v24 = vadd.f32 %v964_v55, %v959_v6  ;;  %v967_v28 = vadd.f32 %v964_v55, %v960_v19 }
 0x1b9   :  { %v968_v30 = vadd.f32 %v964_v55, %v961_v49 }
 0x1ba   :  { %v790_v31 = vrot.slane %v789_v1, 2  ;;  %v803_v32 = vadd.f32 %v802_v61, %v801_v14  ;;  %v969_v14 = vadd.f32 %v964_v55, %v962_v20 }
 0x1bc   :  { %v791_v34 = vadd.f32 %v790_v31, %v789_v1  ;;  %v804_v35 = vrot.slane %v803_v32, 2 }
 0x1be   :  { %v792_v0 = vrot.slane %v791_v34, 1  ;;  %v805_v37 = vadd.f32 %v804_v35, %v803_v32 }
 0x1c0   :  { %v793_v38 = vadd.f32 %v792_v0, %v791_v34  ;;  %v806_v39 = vrot.slane %v805_v37, 1 }
 0x1c2   :  { %v794_v41 = vmul.f32 0.0625, %v793_v38  ;;  %v807_v42 = vadd.f32 %v806_v39, %v805_v37 }
 0x1c4   :  { %v808_v43 = vmul.f32 0.0625, %v807_v42  ;;  %v809_v44 = vmul.f32 %v794_v41, %v794_v41 }
 0x1c6   :  { %v810_v46 = vsub.f32 %v808_v43, %v809_v44 }
 0x1c8   :  { %v811_v47 = vmax.f32 %v810_v46, 0.0 }
 0x1ca   :  { %v812_v51 = vadd.f32 1e-05, %v811_v47 }
 0x1cc   :  { %1295 = vrsqrt.f32 %v812_v51  ;;  %vm819_vm14 = vweird.f32 %v812_v51 }
 0x1d2   :  { %v1296_v53 = vpop.eup %1295 }
 0x1d3   :  { %v814_v59 = vmul.f32 %v1296_v53, %v812_v51  ;;  %vm820_vm13 = vweird.f32 %v1296_v53 }
 0x1d4   :  { %vm821_vm15 = vmor %vm819_vm14, %vm820_vm13 }
 0x1d5   :  { %v815_v62 = vmul.f32 %v1296_v53, %v814_v59 }
 0x1d7   :  { %v816_v63 = vmul.f32 0.5, %v815_v62 }
 0x1d9   :  { %v817_v3 = vsub.f32 1.5, %v816_v63 }
 0x1db   :  { %v818_v7 = vmul.f32 %v1296_v53, %v817_v3 }
 0x1dd   :  { %v822_v11 = vsel %vm821_vm15, %v1296_v53, %v818_v7 }
 0x1de   :  { %v823_v13 = vmul.f32 %v822_v11, %v783_v5 }
 0x1e0   :  { %v824_v17 = vmul.f32 %v823_v13, %v794_v41  ;;  %v971_v18 = vperm.slane %v823_v13, 0 }
 0x1e2   :  { %v825_v21 = vsub.f32 %v784_v57, %v824_v17  ;;  %v973_v15 = vmul.f32 %v971_v18, %v1708_v10  ;;  %v974_v56 = vmul.f32 %v971_v18, %v1704_v12  ;;  %v975_v22 = vmul.f32 %v971_v18, %v1712_v16 }
 0x1e3   :  { %v976_v26 = vmul.f32 %v971_v18, %v1725_v23 }
 0x1e4   :  { %v978_v27 = vperm.slane %v825_v21, 0 }
 0x1e6   :  { %v980_v25 = vadd.f32 %v978_v27, %v973_v15  ;;  %v981_v1 = vadd.f32 %v978_v27, %v974_v56  ;;  %v982_v29 = vadd.f32 %v978_v27, %v975_v22  ;;  %v983_v61 = vadd.f32 %v978_v27, %v976_v26 }
 0x1e8   :  { %v984_v2 = vadd.f32 %v980_v25, %v966_v24  ;;  %v985_v31 = vadd.f32 %v981_v1, %v967_v28  ;;  %v986_v32 = vadd.f32 %v982_v29, %v968_v30  ;;  %v987_v33 = vadd.f32 %v983_v61, %v969_v14 }
 0x1ea   :  { %v988_v10 = vmax.f32 %v984_v2, 0.0  ;;  %v989_v34 = vmax.f32 %v985_v31, 0.0  ;;  %v990_v12 = vmax.f32 %v986_v32, 0.0  ;;  %v991_v35 = vmax.f32 %v987_v33, 0.0 }
 0x1ec   :  { %992 = vst [vmem:[%s1774_s11] sm:$0xff] %v988_v10 }
 0x1ed   :  { %993 = vst [vmem:[%s1774_s11 + $0x8] sm:$0xff] %v989_v34 }
 0x1ee   :  { %994 = vst [vmem:[%s1774_s11 + $0x10] sm:$0xff] %v990_v12 }
 0x1ef   :  { %995 = vst [vmem:[%s1774_s11 + $0x18] sm:$0xff] %v991_v35 }

</bundles_post_ra>
